<compile_context>
chip_gen: v6e
topology: v6e:2x2x1
jax: 0.10.0
libtpu: 0.0.40
codegen_flags: <defaults>
</compile_context>

<pallas_src>
import jax
import jax.numpy as jnp
from jax.experimental import pallas as pl
from jax.experimental.pallas import tpu as pltpu


def mlp_kernel(params_ref, x_ref, o_ref):
    """params_ref: (12,) f32 in SMEM (scalar-prefetched, resident for all grid steps).
       x_ref / o_ref: (2, TILE_B) lane-dense tiles (features on sublanes, batch on lanes)."""
    x = x_ref[...]          # (2, TILE_B)
    x0 = x[0:1, :]          # feature 0 across the whole batch tile
    x1 = x[1:2, :]          # feature 1

    # Layer 1: h = sigmoid(W1 @ x + b1), unrolled into scalar-splat FMAs (VPU) + sigmoid (EUP).
    # params layout: [W1_00, W1_01, W1_10, W1_11, b1_0, b1_1, W2_00, W2_01, W2_10, W2_11, b2_0, b2_1]
    h0 = jax.nn.sigmoid(params_ref[0] * x0 + params_ref[1] * x1 + params_ref[4])
    h1 = jax.nn.sigmoid(params_ref[2] * x0 + params_ref[3] * x1 + params_ref[5])

    # Layer 2: y = sigmoid(W2 @ h + b2)
    y0 = jax.nn.sigmoid(params_ref[6] * h0 + params_ref[7] * h1 + params_ref[10])
    y1 = jax.nn.sigmoid(params_ref[8] * h0 + params_ref[9] * h1 + params_ref[11])

    o_ref[...] = jnp.concatenate([y0, y1], axis=0)   # (2, TILE_B), single lane-dense store


def net_forward(x, w1, b1, w2, b2, *, tile_b=1024):
    """sigmoid(sigmoid(x @ W1.T + b1) @ W2.T + b2), matching the PyTorch Net.

    x  : (B, 2) float32
    w1 : (2, 2) PyTorch layout (out, in)
    b1 : (2,)   (or anything reshapeable to 2 elements)
    w2 : (2, 2)
    b2 : (2,)
    """
    B, F = x.shape
    assert F == 2 and w1.shape == (2, 2) and w2.shape == (2, 2)

    # Pack all 12 parameter scalars into one small operand -> single SMEM prefetch DMA.
    params = jnp.concatenate(
        [w1.reshape(-1), b1.reshape(-1), w2.reshape(-1), b2.reshape(-1)]
    ).astype(jnp.float32)                            # (12,)

    # Lane-dense layout: batch on the lane (last) axis. One transpose in the wrapper.
    x_t = x.astype(jnp.float32).T                    # (2, B)

    # Batch tiling: TILE_B lanes per grid step (multiple of 128); pad B up to a multiple.
    if B < tile_b:
        tile_b = max(128, -(-B // 128) * 128)
    n_tiles = -(-B // tile_b)
    b_pad = n_tiles * tile_b
    if b_pad != B:
        x_t = jnp.pad(x_t, ((0, 0), (0, b_pad - B)))  # zero-padded lanes, sliced off below

    out_t = pl.pallas_call(
        mlp_kernel,
        out_shape=jax.ShapeDtypeStruct((2, b_pad), jnp.float32),
        grid_spec=pltpu.PrefetchScalarGridSpec(
            num_scalar_prefetch=1,                    # params -> SMEM, passed first to kernel
            grid=(n_tiles,),
            in_specs=[pl.BlockSpec((2, tile_b), lambda i, p: (0, i))],
            out_specs=pl.BlockSpec((2, tile_b), lambda i, p: (0, i)),
        ),
        compiler_params=pltpu.CompilerParams(
            dimension_semantics=("parallel",),        # shards batch tiles across v7x's 2 TCs
        ),
    )(params, x_t)

    return out_t[:, :B].T                             # back to (B, 2)


if __name__ == "__main__":
    # Parameters exactly as set in the PyTorch module __init__ (W is (out, in)).
    w1 = jnp.array([[0.15, 0.2], [0.25, 0.3]], dtype=jnp.float32)
    w2 = jnp.array([[0.4, 0.45], [0.5, 0.55]], dtype=jnp.float32)
    b1 = jnp.array([0.35, 0.35], dtype=jnp.float32)
    b2 = jnp.array([0.6, 0.6], dtype=jnp.float32)

    def ref_fn(x):
        h = jax.nn.sigmoid(x @ w1.T + b1)
        return jax.nn.sigmoid(h @ w2.T + b2)

    # Small deterministic input matching the module: batch=2, in_features=2.
    key = jax.random.PRNGKey(0)
    x = jax.random.uniform(key, (2, 2), dtype=jnp.float32)

    out = jax.block_until_ready(net_forward(x, w1, b1, w2, b2))
    assert out.shape == (2, 2)
    assert jnp.allclose(out, ref_fn(x), atol=1e-6, rtol=1e-6), (out, ref_fn(x))

    # Extra check: exercise the multi-tile batch grid + lane padding path.
    x_big = jax.random.uniform(jax.random.PRNGKey(0), (260, 2), dtype=jnp.float32)
    out_big = jax.block_until_ready(net_forward(x_big, w1, b1, w2, b2, tile_b=128))
    assert out_big.shape == (260, 2)
    assert jnp.allclose(out_big, ref_fn(x_big), atol=1e-6, rtol=1e-6)

    print("KERNEL_OK")
</pallas_src>

<mosaic_0001>
module attributes {stable_mosaic.version = 11 : i64} {
  func.func @mlp_kernel(%arg0: i32, %arg1: memref<12xf32, #tpu.memory_space<smem>>, %arg2: memref<2x128xf32, #tpu.memory_space<vmem>>, %arg3: memref<2x128xf32, #tpu.memory_space<vmem>>) attributes {dimension_semantics = [#tpu.dimension_semantics<parallel>], iteration_bounds = array<i64: 1>, scalar_prefetch = 1 : i64, scratch_operands = 0 : i64, tpu.core_type = #tpu.core_type<tc>, window_params = [{transform_indices = @transform_0, window_bounds = array<i64: 2, 128>}, {transform_indices = @transform_1, window_bounds = array<i64: 2, 128>}]} {
    %c0 = arith.constant 0 : index
    %c0_0 = arith.constant 0 : index
    %0 = vector.load %arg2[%c0, %c0_0] : memref<2x128xf32, #tpu.memory_space<vmem>>, vector<2x128xf32>
    %1 = vector.extract_strided_slice %0 {offsets = [0, 0], sizes = [1, 128], strides = [1, 1]} : vector<2x128xf32> to vector<1x128xf32>
    %2 = vector.extract_strided_slice %0 {offsets = [1, 0], sizes = [1, 128], strides = [1, 1]} : vector<2x128xf32> to vector<1x128xf32>
    %c0_1 = arith.constant 0 : index
    %3 = memref.load %arg1[%c0_1] : memref<12xf32, #tpu.memory_space<smem>>
    %4 = vector.broadcast %3 : f32 to vector<1x128xf32>
    %5 = arith.mulf %4, %1 : vector<1x128xf32>
    %c1 = arith.constant 1 : index
    %6 = memref.load %arg1[%c1] : memref<12xf32, #tpu.memory_space<smem>>
    %7 = vector.broadcast %6 : f32 to vector<1x128xf32>
    %8 = arith.mulf %7, %2 : vector<1x128xf32>
    %9 = arith.addf %5, %8 : vector<1x128xf32>
    %c4 = arith.constant 4 : index
    %10 = memref.load %arg1[%c4] : memref<12xf32, #tpu.memory_space<smem>>
    %11 = vector.broadcast %10 : f32 to vector<1x128xf32>
    %12 = arith.addf %9, %11 : vector<1x128xf32>
    %13 = arith.negf %12 : vector<1x128xf32>
    %14 = math.exp %13 : vector<1x128xf32>
    %cst = arith.constant 1.000000e+00 : f32
    %15 = vector.broadcast %cst : f32 to vector<1x128xf32>
    %16 = arith.addf %15, %14 : vector<1x128xf32>
    %17 = arith.divf %15, %16 : vector<1x128xf32>
    %c2 = arith.constant 2 : index
    %18 = memref.load %arg1[%c2] : memref<12xf32, #tpu.memory_space<smem>>
    %19 = vector.broadcast %18 : f32 to vector<1x128xf32>
    %20 = arith.mulf %19, %1 : vector<1x128xf32>
    %c3 = arith.constant 3 : index
    %21 = memref.load %arg1[%c3] : memref<12xf32, #tpu.memory_space<smem>>
    %22 = vector.broadcast %21 : f32 to vector<1x128xf32>
    %23 = arith.mulf %22, %2 : vector<1x128xf32>
    %24 = arith.addf %20, %23 : vector<1x128xf32>
    %c5 = arith.constant 5 : index
    %25 = memref.load %arg1[%c5] : memref<12xf32, #tpu.memory_space<smem>>
    %26 = vector.broadcast %25 : f32 to vector<1x128xf32>
    %27 = arith.addf %24, %26 : vector<1x128xf32>
    %28 = arith.negf %27 : vector<1x128xf32>
    %29 = math.exp %28 : vector<1x128xf32>
    %cst_2 = arith.constant 1.000000e+00 : f32
    %30 = vector.broadcast %cst_2 : f32 to vector<1x128xf32>
    %31 = arith.addf %30, %29 : vector<1x128xf32>
    %32 = arith.divf %30, %31 : vector<1x128xf32>
    %c6 = arith.constant 6 : index
    %33 = memref.load %arg1[%c6] : memref<12xf32, #tpu.memory_space<smem>>
    %34 = vector.broadcast %33 : f32 to vector<1x128xf32>
    %35 = arith.mulf %34, %17 : vector<1x128xf32>
    %c7 = arith.constant 7 : index
    %36 = memref.load %arg1[%c7] : memref<12xf32, #tpu.memory_space<smem>>
    %37 = vector.broadcast %36 : f32 to vector<1x128xf32>
    %38 = arith.mulf %37, %32 : vector<1x128xf32>
    %39 = arith.addf %35, %38 : vector<1x128xf32>
    %c10 = arith.constant 10 : index
    %40 = memref.load %arg1[%c10] : memref<12xf32, #tpu.memory_space<smem>>
    %41 = vector.broadcast %40 : f32 to vector<1x128xf32>
    %42 = arith.addf %39, %41 : vector<1x128xf32>
    %43 = arith.negf %42 : vector<1x128xf32>
    %44 = math.exp %43 : vector<1x128xf32>
    %cst_3 = arith.constant 1.000000e+00 : f32
    %45 = vector.broadcast %cst_3 : f32 to vector<1x128xf32>
    %46 = arith.addf %45, %44 : vector<1x128xf32>
    %47 = arith.divf %45, %46 : vector<1x128xf32>
    %c8 = arith.constant 8 : index
    %48 = memref.load %arg1[%c8] : memref<12xf32, #tpu.memory_space<smem>>
    %49 = vector.broadcast %48 : f32 to vector<1x128xf32>
    %50 = arith.mulf %49, %17 : vector<1x128xf32>
    %c9 = arith.constant 9 : index
    %51 = memref.load %arg1[%c9] : memref<12xf32, #tpu.memory_space<smem>>
    %52 = vector.broadcast %51 : f32 to vector<1x128xf32>
    %53 = arith.mulf %52, %32 : vector<1x128xf32>
    %54 = arith.addf %50, %53 : vector<1x128xf32>
    %c11 = arith.constant 11 : index
    %55 = memref.load %arg1[%c11] : memref<12xf32, #tpu.memory_space<smem>>
    %56 = vector.broadcast %55 : f32 to vector<1x128xf32>
    %57 = arith.addf %54, %56 : vector<1x128xf32>
    %58 = arith.negf %57 : vector<1x128xf32>
    %59 = math.exp %58 : vector<1x128xf32>
    %cst_4 = arith.constant 1.000000e+00 : f32
    %60 = vector.broadcast %cst_4 : f32 to vector<1x128xf32>
    %61 = arith.addf %60, %59 : vector<1x128xf32>
    %62 = arith.divf %60, %61 : vector<1x128xf32>
    %63 = tpu.concatenate %47, %62 in 0 : vector<1x128xf32>, vector<1x128xf32> -> vector<2x128xf32>
    %c0_5 = arith.constant 0 : index
    %c0_6 = arith.constant 0 : index
    %64 = vector.load %arg3[%c0_5, %c0_6] : memref<2x128xf32, #tpu.memory_space<vmem>>, vector<2x128xf32>
    tpu.vector_store %arg3[%c0_5, %c0_6], %63 {strides = array<i32>} : memref<2x128xf32, #tpu.memory_space<vmem>>, vector<2x128xf32>,
    return
  }
  func.func @transform_0(%arg0: i32, %arg1: memref<12xf32, #tpu.memory_space<smem>>) -> (i32, i32) {
    %c0_i32 = arith.constant 0 : i32
    %c0_i32_0 = arith.constant 0 : i32
    return %c0_i32, %arg0 : i32, i32
  }
  func.func @transform_1(%arg0: i32, %arg1: memref<12xf32, #tpu.memory_space<smem>>) -> (i32, i32) {
    %c0_i32 = arith.constant 0 : i32
    %c0_i32_0 = arith.constant 0 : i32
    return %c0_i32, %arg0 : i32, i32
  }
}

</mosaic_0001>

<bundles_post_ra>
// kernel: tpu_custom_call.1
= control target key start
LH: loop header
LB: loop body
LE: loop exit
PB: predicated region body
PF: predicated region fallthrough
CT: control target
= control target key end

     0   :  { %s206_s9 = smov [#allocation3]   ;;  %s233_s0 = inlined_call_operand.hbm [shape: f32[12], index: 0, kind: input, shape index: {}]   ;;  %s234_s1 = inlined_call_operand.hbm [shape: f32[2,128], index: 1, kind: input, shape index: {}]   ;;  %s235_s2 = inlined_call_operand.hbm [shape: f32[2,128], index: 2, kind: output, shape index: {}]  }
   0x1   :  { %8 = dma.hbm_to_smem %s233_s0, 16, %s206_s9, [#allocation2] }
   0x2   :  { %200 = dma.done.wait [#allocation2], 16 }
   0x3   :  { %201 = vsyncadd [#allocation2], 4294967280 }
   0x4   :  { %10 = sfence }
   0x5   :  { %11 = vsyncpa [#allocation5], 0 }
   0x6   :  { %12 = vsyncpa [#allocation6], 0  ;;  %s207_s12 = smov [#allocation4]  }
   0x7   :  { %s19_s13 = sshll.u32 %s207_s12, 4  ;;  %s20_s13 = int_to_ptr.vmem [resolvable:$true] %s19_s13 }
   0x8   :  { %s168_s14 = scalar_lea.vmem %s20_s13, 32  ;;  %p173_p1 = scmp.lt.s32.totalorder %s20_s13, %s20_s13 }
   0x9   :  { %p169_p0 = scmp.ne.s32.totalorder %s20_s13, %s168_s14  ;;  %p174_p2 = scmp.lt.s32.totalorder %s168_s14, %s168_s14 }
   0xb   :  { %p175_p3 = por %p174_p2, %p173_p1 }
   0xd   :  { %p176_p4 = pnand %p175_p3, %p169_p0 }
   0xf   :  { %179 = shalt.err (!%p176_p4)
}
  0x10   :  { %22 = dma.hbm_to_vmem [thread:$0]  %s234_s1, 32, %s20_s13, [#allocation5]  }
  0x11   :  { %202 = dma.done.wait [#allocation5], 32  }
  0x12   :  { %203 = vsyncadd [#allocation5], 4294967264  ;;  %s27_s0 = sld [smem:[#allocation3]]  ;;  %v26_v0 = vld [vmem:[#allocation4] sm:$0x3]  ;;  %s208_s27 = smov [#allocation7]  }
  0x13   :  { %s118_s17 = sld [smem:[#allocation3 + $0x1]]  ;;  %s109_s28 = sshll.u32 %s208_s27, 4  ;;  %vm100_vm0 = vcmask 1040384   ;;  %s110_s28 = int_to_ptr.vmem [resolvable:$true] %s109_s28 }
  0x14   :  { %s119_s18 = sld [smem:[#allocation3 + $0x4]]  ;;  %s180_s29 = scalar_lea.vmem %s110_s28, 32 }
  0x15   :  { %s121_s19 = sld [smem:[#allocation3 + $0x2]]  ;;  %p181_p5 = scmp.ne.s32.totalorder %s110_s28, %s180_s29 }
  0x16   :  { %s122_s20 = sld [smem:[#allocation3 + $0x3]]  ;;  %p185_p6 = scmp.lt.s32.totalorder %s110_s28, %s110_s28 }
  0x17   :  { %s123_s21 = sld [smem:[#allocation3 + $0x5]]  ;;  %p186_p7 = scmp.lt.s32.totalorder %s180_s29, %s180_s29 }
  0x18   :  { %v28_v1 = vstv %s27_s0  ;;  %s125_s1 = sld [smem:[#allocation3 + $0x6]] }
  0x19   :  { %v31_v2 = vstv %s118_s17  ;;  %v29_v3 = vmul.f32 %v28_v1, %v26_v0  ;;  %s129_s22 = sld [smem:[#allocation3 + $0x8]]  ;;  %p187_p8 = por %p186_p7, %p185_p6 }
  0x1a   :  { %v32_v4 = vmul.f32 %v31_v2, %v26_v0  ;;  %v38_v8 = vstv %s119_s18  ;;  %s126_s23 = sld [smem:[#allocation3 + $0x7]] }
  0x1b   :  { %v47_v5 = vstv %s121_s19  ;;  %s130_s24 = sld [smem:[#allocation3 + $0x9]]  ;;  %p188_p9 = pnand %p187_p8, %p181_p5 }
  0x1c   :  { %v34_v6 = vrot.slane %v32_v4, 1  ;;  %v50_v7 = vstv %s122_s20  ;;  %v48_v9 = vmul.f32 %v47_v5, %v26_v0  ;;  %s127_s25 = sld [smem:[#allocation3 + $0xa]] }
  0x1d   :  { %v51_v10 = vmul.f32 %v50_v7, %v26_v0  ;;  %v57_v14 = vstv %s123_s21  ;;  %s131_s26 = sld [smem:[#allocation3 + $0xb]] }
  0x1e   :  { %v36_v11 = vadd.f32 %v34_v6, %v29_v3  ;;  %v66_v23 = vstv %s125_s1 }
  0x1f   :  { %v53_v12 = vrot.slane %v51_v10, 1  ;;  %v82_v24 = vstv %s129_s22 }
  0x20   :  { %v39_v13 = vadd.f32 %v38_v8, %v36_v11  ;;  %v69_v26 = vstv %s126_s23 }
  0x21   :  { %v55_v15 = vadd.f32 %v53_v12, %v48_v9  ;;  %v85_v27 = vstv %s130_s24 }
  0x22   :  { %v120_v16 = vmul.f32 -1.442695, %v39_v13  ;;  %v73_v33 = vstv %s127_s25 }
  0x23   :  { %v58_v17 = vadd.f32 %v57_v14, %v55_v15  ;;  %v89_v34 = vstv %s131_s26 }
  0x24   :  { %136 = vpow2.f32 %v120_v16 }
  0x25   :  { %v124_v18 = vmul.f32 -1.442695, %v58_v17 }
  0x27   :  { %138 = vpow2.f32 %v124_v18 }
  0x31   :  { %v137_v19 = vpop.eup %136 }
  0x32   :  { %v43_v20 = vadd.f32 1.0, %v137_v19 }
  0x34   :  { %v139_v21 = vpop.eup %138  ;;  %140 = vrcp.f32 %v43_v20 }
  0x35   :  { %v62_v22 = vadd.f32 1.0, %v139_v21 }
  0x37   :  { %142 = vrcp.f32 %v62_v22 }
  0x41   :  { %v141_v25 = vpop.eup %140 }
  0x42   :  { %v67_v28 = vmul.f32 %v141_v25, %v66_v23  ;;  %v83_v29 = vmul.f32 %v141_v25, %v82_v24 }
  0x44   :  { %v143_v30 = vpop.eup %142 }
  0x45   :  { %v70_v31 = vmul.f32 %v143_v30, %v69_v26  ;;  %v86_v32 = vmul.f32 %v143_v30, %v85_v27 }
  0x47   :  { %v71_v35 = vadd.f32 %v70_v31, %v67_v28  ;;  %v87_v36 = vadd.f32 %v86_v32, %v83_v29 }
  0x49   :  { %v74_v37 = vadd.f32 %v73_v33, %v71_v35  ;;  %v90_v38 = vadd.f32 %v89_v34, %v87_v36 }
  0x4b   :  { %v128_v39 = vmul.f32 -1.442695, %v74_v37  ;;  %v132_v40 = vmul.f32 -1.442695, %v90_v38 }
  0x4d   :  { %144 = vpow2.f32 %v128_v39 }
  0x4e   :  { %146 = vpow2.f32 %v132_v40 }
  0x5a   :  { %v145_v41 = vpop.eup %144 }
  0x5b   :  { %v147_v42 = vpop.eup %146  ;;  %v78_v43 = vadd.f32 1.0, %v145_v41 }
  0x5c   :  { %v94_v44 = vadd.f32 1.0, %v147_v42 }
  0x5d   :  { %148 = vrcp.f32 %v78_v43 }
  0x5e   :  { %150 = vrcp.f32 %v94_v44 }
  0x6a   :  { %v149_v45 = vpop.eup %148 }
  0x6b   :  { %v151_v46 = vpop.eup %150 }
  0x6c   :  { %v98_v47 = vrot.slane %v151_v46, 7 }
  0x6e   :  { %v101_v48 = vsel %vm100_vm0, %v149_v45, %v98_v47 }
  0x6f   :  { %102 = vst [vmem:[#allocation7] sm:$0x3] %v101_v48 }
  0x70   :  { %191 = shalt.err (!%p188_p9)
}
  0x71   :  { %112 = dma.vmem_to_hbm [thread:$0]  %s110_s28, 32, %s235_s2, [#allocation6]  }
  0x72   :  { %204 = dma.done.wait [#allocation6], 32  }
  0x73   :  { %205 = vsyncadd [#allocation6], 4294967264 }
  0x74   :  { %116 = vsyncpa [#allocation5], 1 }
  0x75   :  { %117 = vsyncpa [#allocation6], 1 }

</bundles_post_ra>
